<compile_context>
chip_gen: v7x
topology: tpu7x:2x2x1
jax: 0.10.0
libtpu: 0.0.40
codegen_flags: <defaults>
</compile_context>

<pallas_src>
import math

import jax
import jax.numpy as jnp
from jax.experimental import pallas as pl
from jax.experimental.pallas import tpu as pltpu

EPS = 1e-5
LANE = 128                       # pad all feature widths to the 128-lane width
SUBLANE = 8
DEFAULT_TB = 256                 # batch-tile rows (multiple of 8)
VMEM_LIMIT = 32 * 1024 * 1024    # explicit; comfortably inside v7x's 64 MiB VMEM


def _round_up(x, m):
    return ((x + m - 1) // m) * m


# ----------------------------- kernels --------------------------------------


def _stats_kernel(x_ref, sum_ref, sq_ref):
    """Accumulate per-column sum / sum-of-squares across batch tiles."""
    @pl.when(pl.program_id(0) == 0)
    def _():
        sum_ref[...] = jnp.zeros_like(sum_ref)
        sq_ref[...] = jnp.zeros_like(sq_ref)

    x = x_ref[...]
    sum_ref[...] += jnp.sum(x, axis=0, keepdims=True)
    sq_ref[...] += jnp.sum(x * x, axis=0, keepdims=True)


def _make_layer_kernel(tb, valid_rows, relu, with_stats, mxu_dtype):
    """Fused BN-affine -> Linear(+bias) [-> ReLU] [-> accumulate output stats]."""

    def kernel(x_ref, scale_ref, shift_ref, w_ref, b_ref, *out_refs):
        if with_stats:
            h_ref, sum_ref, sq_ref = out_refs

            @pl.when(pl.program_id(0) == 0)
            def _():
                sum_ref[...] = jnp.zeros_like(sum_ref)
                sq_ref[...] = jnp.zeros_like(sq_ref)
        else:
            (h_ref,) = out_refs

        # fused BatchNorm of the *previous* layer: x*scale + shift (f32, VPU)
        xn = x_ref[...] * scale_ref[...] + shift_ref[...]
        # bf16 (or f32) into the MXU, f32 accumulation
        h = jnp.dot(xn.astype(mxu_dtype), w_ref[...],
                    preferred_element_type=jnp.float32) + b_ref[...]
        if relu:
            h = jnp.maximum(h, 0.0)
        if with_stats:
            # zero the batch-padding rows so the global BN statistics stay exact
            row = (jax.lax.broadcasted_iota(jnp.int32, (tb, LANE), 0)
                   + pl.program_id(0) * tb)
            h = jnp.where(row < valid_rows, h, 0.0)
            sum_ref[...] += jnp.sum(h, axis=0, keepdims=True)
            sq_ref[...] += jnp.sum(h * h, axis=0, keepdims=True)
        h_ref[...] = h

    return kernel


def _bn_scale_shift(col_sum, col_sq, n, gamma, beta):
    """Training-mode BN (biased variance) folded into a per-column affine."""
    mean = col_sum / n
    var = jnp.maximum(col_sq / n - mean * mean, 0.0)     # keep in f32
    scale = gamma * jax.lax.rsqrt(var + EPS)
    return scale, beta - mean * scale


# ----------------------------- forward wrapper -------------------------------


def ffnn_forward(emb_x, cont, params, *, tb=DEFAULT_TB):
    B = emb_x.shape[0]
    E, C, O = params["E"], params["C"], params["O"]
    F = LANE
    mxu_dtype = params["hidden"][0]["w"].dtype
    mxu_bytes = jnp.dtype(mxu_dtype).itemsize

    tb = min(tb, _round_up(B, SUBLANE))
    Bp = _round_up(B, tb)
    nb = pl.cdiv(Bp, tb)

    # lane-padded input slab [emb || cont || zeros]: merged layer-1 operand.
    x0 = jnp.zeros((Bp, F), jnp.float32)
    x0 = x0.at[:B, :E].set(emb_x.astype(jnp.float32))
    x0 = x0.at[:B, E:E + C].set(cont.astype(jnp.float32))
    # TODO(synk): emb_dropout / lin_layer_dropouts are identity (eval-mode fwd).

    x_spec = pl.BlockSpec((tb, F), lambda i: (i, 0))     # batch-tiled activations
    row_spec = pl.BlockSpec((1, F), lambda i: (0, 0))    # resident (1,128) params/accums
    w_spec = pl.BlockSpec((F, F), lambda i: (0, 0))      # weights resident across tiles
    stat_shape = jax.ShapeDtypeStruct((1, F), jnp.float32)
    act_shape = jax.ShapeDtypeStruct((Bp, F), jnp.float32)

    def cparams(sem):
        return pltpu.CompilerParams(dimension_semantics=(sem,),
                                    vmem_limit_bytes=VMEM_LIMIT)

    # --- pass 0: global per-column stats of the input slab (first BatchNorm) ---
    col_sum, col_sq = pl.pallas_call(
        _stats_kernel,
        out_shape=(stat_shape, stat_shape),
        grid=(nb,),
        in_specs=[x_spec],
        out_specs=(row_spec, row_spec),
        compiler_params=cparams("arbitrary"),            # accumulators revisit block
        cost_estimate=pl.CostEstimate(flops=3 * Bp * F, transcendentals=0,
                                      bytes_accessed=Bp * F * 4 + 2 * F * 4),
    )(x0)

    # first_bn_layer applies only to the continuous columns; embedding columns
    # pass through unchanged; pad columns are forced to zero.
    col = jnp.arange(F, dtype=jnp.int32)[None, :]
    bn_s, bn_t = _bn_scale_shift(col_sum, col_sq, B, params["gc"], params["bc"])
    is_cont = (col >= E) & (col < E + C)
    scale = jnp.where(is_cont, bn_s, jnp.where(col < E, 1.0, 0.0))
    shift = jnp.where(is_cont, bn_t, 0.0)

    # --- hidden layers: BN(prev) -> Linear -> ReLU -> stats for next BN ---
    x = x0
    for layer in params["hidden"]:
        kern = _make_layer_kernel(tb, B, relu=True, with_stats=True,
                                  mxu_dtype=mxu_dtype)
        x, col_sum, col_sq = pl.pallas_call(
            kern,
            out_shape=(act_shape, stat_shape, stat_shape),
            grid=(nb,),
            in_specs=[x_spec, row_spec, row_spec, w_spec, row_spec],
            out_specs=(x_spec, row_spec, row_spec),
            compiler_params=cparams("arbitrary"),
            cost_estimate=pl.CostEstimate(
                flops=2 * Bp * F * F + 8 * Bp * F, transcendentals=0,
                bytes_accessed=2 * Bp * F * 4 + F * F * mxu_bytes + 5 * F * 4),
        )(x, scale, shift, layer["w"], layer["b"])
        scale, shift = _bn_scale_shift(col_sum, col_sq, B,
                                       layer["gamma"], layer["beta"])

    # --- output layer: BN(prev) -> Linear, lane-dense (128-wide) store ---
    out_kern = _make_layer_kernel(tb, B, relu=False, with_stats=False,
                                  mxu_dtype=mxu_dtype)
    out = pl.pallas_call(
        out_kern,
        out_shape=act_shape,
        grid=(nb,),
        in_specs=[x_spec, row_spec, row_spec, w_spec, row_spec],
        out_specs=x_spec,
        compiler_params=cparams("parallel"),             # no accumulator here
        cost_estimate=pl.CostEstimate(
            flops=2 * Bp * F * F, transcendentals=0,
            bytes_accessed=2 * Bp * F * 4 + F * F * mxu_bytes + 3 * F * 4),
    )(x, scale, shift, params["wo"], params["bo"])

    return out[:B, :O]


# ----------------------------- parameter packing -----------------------------


def build_params(emb_dims, no_of_cont, lin_layer_sizes, output_size, raw,
                 mxu_dtype=jnp.bfloat16):
    E = sum(d for _, d in emb_dims)
    C = no_of_cont
    F = LANE
    # feature tiling beyond one 128-lane block is out of scope for this model
    assert E + C <= F and output_size <= F and all(h <= F for h in lin_layer_sizes)

    def pad_w(w_out_in, in_dim, out_dim):
        wp = jnp.zeros((F, F), jnp.float32)
        wp = wp.at[:in_dim, :out_dim].set(jnp.asarray(w_out_in, jnp.float32).T)
        return wp.astype(mxu_dtype)              # weights stored in MXU dtype

    def pad_row(v, n, fill=0.0):
        r = jnp.full((1, F), fill, jnp.float32)
        return r.at[0, :n].set(jnp.asarray(v, jnp.float32).reshape(-1))

    hidden = []
    in_dim = E + C
    for i, h in enumerate(lin_layer_sizes):
        hidden.append(dict(
            w=pad_w(raw["w"][i], in_dim, h),
            b=pad_row(raw["b"][i], h),
            gamma=pad_row(raw["g"][i], h, fill=1.0),
            beta=pad_row(raw["be"][i], h),
        ))
        in_dim = h
    return dict(
        E=E, C=C, O=output_size,
        gc=pad_row(raw["gc"], C, fill=1.0),
        bc=pad_row(raw["bc"], C),
        hidden=hidden,
        wo=pad_w(raw["wo"], lin_layer_sizes[-1], output_size),
        bo=pad_row(raw["bo"], output_size),
    )


# ----------------------------- reference & init ------------------------------


def reference_forward(emb_x, cont, raw):
    """Pure-JAX f32 reference matching the PyTorch module (eval-mode dropout)."""
    hp = jax.lax.Precision.HIGHEST

    def bn(x, g, b):
        m = jnp.mean(x, axis=0, keepdims=True)
        v = jnp.mean((x - m) ** 2, axis=0, keepdims=True)   # biased variance
        return (x - m) / jnp.sqrt(v + EPS) * g + b

    x = jnp.concatenate([emb_x, bn(cont, raw["gc"], raw["bc"])], axis=1)
    for w, b, g, be in zip(raw["w"], raw["b"], raw["g"], raw["be"]):
        x = jnp.maximum(jnp.dot(x, w.T, precision=hp) + b, 0.0)
        x = bn(x, g, be)
    return jnp.dot(x, raw["wo"].T, precision=hp) + raw["bo"]


def kaiming_normal(key, out_f, in_f):
    return jax.random.normal(key, (out_f, in_f), jnp.float32) * math.sqrt(2.0 / in_f)


def linear_bias(key, in_f, out_f):
    bound = 1.0 / math.sqrt(in_f)
    return jax.random.uniform(key, (out_f,), jnp.float32, -bound, bound)


# ----------------------------- demo -----------------------------------------


if __name__ == "__main__":
    emb_dims = [(10, 4), (8, 3)]          # -> no_of_embs = 7
    no_of_cont = 5
    lin_layer_sizes = [32, 16]
    output_size = 3
    batch = 8   # NOTE: tune at >=256 rows for real perf; B=8 is overhead-bound.

    no_of_embs = sum(d for _, d in emb_dims)
    in_features = no_of_embs + no_of_cont

    key = jax.random.PRNGKey(0)
    keys = jax.random.split(key, 12)

    emb_tables = [jax.random.normal(keys[i], (n, d), jnp.float32)
                  for i, (n, d) in enumerate(emb_dims)]

    raw = {
        "w": [kaiming_normal(keys[2], lin_layer_sizes[0], in_features),
              kaiming_normal(keys[3], lin_layer_sizes[1], lin_layer_sizes[0])],
        "b": [linear_bias(keys[4], in_features, lin_layer_sizes[0]),
              linear_bias(keys[5], lin_layer_sizes[0], lin_layer_sizes[1])],
        "g": [jnp.ones((s,), jnp.float32) for s in lin_layer_sizes],
        "be": [jnp.zeros((s,), jnp.float32) for s in lin_layer_sizes],
        "gc": jnp.ones((no_of_cont,), jnp.float32),
        "bc": jnp.zeros((no_of_cont,), jnp.float32),
        "wo": kaiming_normal(keys[6], output_size, lin_layer_sizes[-1]),
        "bo": linear_bias(keys[7], lin_layer_sizes[-1], output_size),
    }

    cont_data = jax.random.normal(keys[8], (batch, no_of_cont), jnp.float32)
    cat_data = jnp.stack(
        [jax.random.randint(keys[9], (batch,), 0, emb_dims[0][0]),
         jax.random.randint(keys[10], (batch,), 0, emb_dims[1][0])],
        axis=1).astype(jnp.int32)

    # embedding lookups + concat (glue, not the hot path)
    emb_x = jnp.concatenate(
        [emb_tables[i][cat_data[:, i]] for i in range(len(emb_dims))], axis=1)

    # f32 MXU path: validate against the pure-JAX reference
    params_f32 = build_params(emb_dims, no_of_cont, lin_layer_sizes, output_size,
                              raw, mxu_dtype=jnp.float32)
    out_f32 = jax.block_until_ready(ffnn_forward(emb_x, cont_data, params_f32))
    ref = reference_forward(emb_x, cont_data, raw)
    assert out_f32.shape == (batch, output_size)
    assert bool(jnp.allclose(out_f32, ref, atol=5e-2, rtol=5e-2))

    # bf16 MXU path (recommended on v6e/v7x): run and sanity-check
    params_bf16 = build_params(emb_dims, no_of_cont, lin_layer_sizes, output_size,
                               raw, mxu_dtype=jnp.bfloat16)
    out_bf16 = jax.block_until_ready(ffnn_forward(emb_x, cont_data, params_bf16))
    assert out_bf16.shape == (batch, output_size)
    assert bool(jnp.isfinite(out_bf16).all())

    print("KERNEL_OK")
</pallas_src>

<mosaic_0001>
module attributes {stable_mosaic.version = 11 : i64} {
  func.func @_stats_kernel(%arg0: i32, %arg1: memref<8x128xf32, #tpu.memory_space<vmem>>, %arg2: memref<1x128xf32, #tpu.memory_space<vmem>>, %arg3: memref<1x128xf32, #tpu.memory_space<vmem>>) attributes {dimension_semantics = [#tpu.dimension_semantics<arbitrary>], iteration_bounds = array<i64: 1>, scalar_prefetch = 0 : i64, scratch_operands = 0 : i64, tpu.core_type = #tpu.core_type<tc>, window_params = [{transform_indices = @transform_0, window_bounds = array<i64: 8, 128>}, {pipeline_mode = #tpu.pipeline_mode<synchronous>, transform_indices = @transform_1, window_bounds = array<i64: 1, 128>}, {pipeline_mode = #tpu.pipeline_mode<synchronous>, transform_indices = @transform_2, window_bounds = array<i64: 1, 128>}]} {
    %c0_i32 = arith.constant 0 : i32
    %0 = arith.cmpi eq, %arg0, %c0_i32 : i32
    %1 = arith.extui %0 : i1 to i32
    %c0_i32_0 = arith.constant 0 : i32
    %2 = arith.cmpi ne, %1, %c0_i32_0 : i32
    scf.if %2 {
      %cst_11 = arith.constant 0.000000e+00 : f32
      %15 = vector.broadcast %cst_11 : f32 to vector<1x128xf32>
      %c0_12 = arith.constant 0 : index
      %c0_13 = arith.constant 0 : index
      %16 = vector.load %arg2[%c0_12, %c0_13] : memref<1x128xf32, #tpu.memory_space<vmem>>, vector<1x128xf32>
      tpu.vector_store %arg2[%c0_12, %c0_13], %15 {strides = array<i32>} : memref<1x128xf32, #tpu.memory_space<vmem>>, vector<1x128xf32>,
      %cst_14 = arith.constant 0.000000e+00 : f32
      %17 = vector.broadcast %cst_14 : f32 to vector<1x128xf32>
      %c0_15 = arith.constant 0 : index
      %c0_16 = arith.constant 0 : index
      %18 = vector.load %arg3[%c0_15, %c0_16] : memref<1x128xf32, #tpu.memory_space<vmem>>, vector<1x128xf32>
      tpu.vector_store %arg3[%c0_15, %c0_16], %17 {strides = array<i32>} : memref<1x128xf32, #tpu.memory_space<vmem>>, vector<1x128xf32>,
    } else {
    }
    %c0 = arith.constant 0 : index
    %c0_1 = arith.constant 0 : index
    %3 = vector.load %arg1[%c0, %c0_1] : memref<8x128xf32, #tpu.memory_space<vmem>>, vector<8x128xf32>
    %c0_2 = arith.constant 0 : index
    %c0_3 = arith.constant 0 : index
    %4 = vector.load %arg2[%c0_2, %c0_3] : memref<1x128xf32, #tpu.memory_space<vmem>>, vector<1x128xf32>
    %cst = arith.constant dense<0.000000e+00> : vector<128xf32>
    %5 = vector.multi_reduction <add>, %3, %cst [0] : vector<8x128xf32> to vector<128xf32>
    %6 = vector.shape_cast %5 : vector<128xf32> to vector<1x128xf32>
    %7 = arith.addf %4, %6 : vector<1x128xf32>
    %c0_4 = arith.constant 0 : index
    %c0_5 = arith.constant 0 : index
    %8 = vector.load %arg2[%c0_4, %c0_5] : memref<1x128xf32, #tpu.memory_space<vmem>>, vector<1x128xf32>
    tpu.vector_store %arg2[%c0_4, %c0_5], %7 {strides = array<i32>} : memref<1x128xf32, #tpu.memory_space<vmem>>, vector<1x128xf32>,
    %c0_6 = arith.constant 0 : index
    %c0_7 = arith.constant 0 : index
    %9 = vector.load %arg3[%c0_6, %c0_7] : memref<1x128xf32, #tpu.memory_space<vmem>>, vector<1x128xf32>
    %10 = arith.mulf %3, %3 : vector<8x128xf32>
    %cst_8 = arith.constant dense<0.000000e+00> : vector<128xf32>
    %11 = vector.multi_reduction <add>, %10, %cst_8 [0] : vector<8x128xf32> to vector<128xf32>
    %12 = vector.shape_cast %11 : vector<128xf32> to vector<1x128xf32>
    %13 = arith.addf %9, %12 : vector<1x128xf32>
    %c0_9 = arith.constant 0 : index
    %c0_10 = arith.constant 0 : index
    %14 = vector.load %arg3[%c0_9, %c0_10] : memref<1x128xf32, #tpu.memory_space<vmem>>, vector<1x128xf32>
    tpu.vector_store %arg3[%c0_9, %c0_10], %13 {strides = array<i32>} : memref<1x128xf32, #tpu.memory_space<vmem>>, vector<1x128xf32>,
    return
  }
  func.func @transform_0(%arg0: i32) -> (i32, i32) {
    %c0_i32 = arith.constant 0 : i32
    %c0_i32_0 = arith.constant 0 : i32
    return %arg0, %c0_i32 : i32, i32
  }
  func.func @transform_1(%arg0: i32) -> (i32, i32) {
    %c0_i32 = arith.constant 0 : i32
    %c0_i32_0 = arith.constant 0 : i32
    %c0_i32_1 = arith.constant 0 : i32
    return %c0_i32, %c0_i32_0 : i32, i32
  }
  func.func @transform_2(%arg0: i32) -> (i32, i32) {
    %c0_i32 = arith.constant 0 : i32
    %c0_i32_0 = arith.constant 0 : i32
    %c0_i32_1 = arith.constant 0 : i32
    return %c0_i32, %c0_i32_0 : i32, i32
  }
}

</mosaic_0001>

<bundles_post_ra>
// kernel: tpu_custom_call.1
= control target key start
LH: loop header
LB: loop body
LE: loop exit
PB: predicated region body
PF: predicated region fallthrough
CT: control target
= control target key end

     0   :  { %8 = vsyncpa [#allocation3], 0  ;;  %s218_s0 = inlined_call_operand.hbm [shape: f32[8,128], index: 0, kind: input, shape index: {}]   ;;  %s219_s1 = inlined_call_operand.hbm [shape: f32[1,128], index: 1, kind: output, shape index: {0}]   ;;  %s220_s2 = inlined_call_operand.hbm [shape: f32[1,128], index: 2, kind: output, shape index: {1}]  }
   0x1   :  { %9 = vsyncpa [#allocation4], 0 }
   0x2   :  { %10 = vsyncpa [#allocation7], 0  ;;  %s155_s9 = smov [#allocation2]   ;;  %s83_s13 = scalar_lea.hbm %s218_s0, 128 }
   0x3   :  { %s17_s10 = sshll.u32 %s155_s9, 4  ;;  %p84_p0 = scmp.ne.s32.totalorder %s218_s0, %s83_s13  ;;  %s18_s10 = int_to_ptr.vmem [resolvable:$true] %s17_s10 }
   0x4   :  { %p87_p1 = scmp.lt.u32.totalorder %s83_s13, %s218_s0 }
   0x6   :  { %p89_p2 = pnand %p87_p1, %p84_p0 }
   0x8   :  { %92 = shalt.err (!%p89_p2)
}
   0x9   :  { %s93_s18 = scalar_lea.vmem %s18_s10, 128  ;;  %p98_p4 = scmp.lt.s32.totalorder %s18_s10, %s18_s10 }
   0xa   :  { %p94_p3 = scmp.ne.s32.totalorder %s18_s10, %s93_s18  ;;  %p99_p5 = scmp.lt.s32.totalorder %s93_s18, %s93_s18 }
   0xc   :  { %p100_p6 = por %p99_p5, %p98_p4 }
   0xe   :  { %p101_p7 = pnand %p100_p6, %p94_p3 }
  0x10   :  { %104 = shalt.err (!%p101_p7)
}
  0x11   :  { %20 = dma.hbm_to_vmem [thread:$0]  %s218_s0, 128, %s18_s10, [#allocation3]  }
  0x12   :  { %149 = dma.done.wait [#allocation3], 128  }
  0x13   :  { %150 = vsyncadd [#allocation3], 4294967168  ;;  %v156_v0 = vmov 0.0   ;;  %v30_v1 = vld [vmem:[#allocation2] sm:$0xff]  ;;  %s157_s21 = smov [#allocation5]   ;;  %s158_s0 = smov [#allocation6]  }
  0x14   :  { %28 = vst [vmem:[#allocation5] sm:$0x1] %v156_v0  ;;  %29 = vst [vmem:[#allocation6] sm:$0x1] %v156_v0  ;;  %v32_v2 = vrot.slane %v30_v1, 4  ;;  %v41_v3 = vmul.f32 %v30_v1, %v30_v1  ;;  %s56_s22 = sshll.u32 %s157_s21, 4  ;;  %s57_s22 = int_to_ptr.vmem [resolvable:$true] %s56_s22 }
  0x15   :  { %s66_s23 = sshll.u32 %s158_s0, 4  ;;  %s105_s24 = scalar_lea.vmem %s57_s22, 16  ;;  %s186_s23 = int_to_ptr.vmem [resolvable:$true] %s66_s23 }
  0x16   :  { %v33_v4 = vadd.f32 %v32_v2, %v30_v1  ;;  %v42_v5 = vrot.slane %v41_v3, 4  ;;  %p106_p8 = scmp.ne.s32.totalorder %s57_s22, %s105_s24  ;;  %s109_s25 = scalar_lea.vmem %s57_s22, 32 }
  0x17   :  { %p110_p9 = scmp.lt.s32.totalorder %s57_s22, %s57_s22  ;;  %p111_p10 = scmp.lt.s32.totalorder %s109_s25, %s105_s24 }
  0x18   :  { %v34_v6 = vrot.slane %v33_v4, 2  ;;  %v43_v7 = vadd.f32 %v42_v5, %v41_v3 }
  0x19   :  { %p112_p11 = por %p111_p10, %p110_p9 }
  0x1a   :  { %v35_v8 = vadd.f32 %v34_v6, %v33_v4  ;;  %v44_v9 = vrot.slane %v43_v7, 2 }
  0x1b   :  { %v31_v12 = vld [vmem:[#allocation5] sm:$0x1]  ;;  %v40_v15 = vld [vmem:[#allocation6] sm:$0x1]  ;;  %p113_p12 = pnand %p112_p11, %p106_p8 }
  0x1c   :  { %v36_v10 = vrot.slane %v35_v8, 1  ;;  %v45_v11 = vadd.f32 %v44_v9, %v43_v7 }
  0x1e   :  { %v37_v13 = vadd.f32 %v36_v10, %v35_v8  ;;  %v46_v14 = vrot.slane %v45_v11, 1 }
  0x20   :  { %v38_v16 = vadd.f32 %v37_v13, %v31_v12  ;;  %v47_v17 = vadd.f32 %v46_v14, %v45_v11 }
  0x22   :  { %39 = vst [vmem:[#allocation5] sm:$0x1] %v38_v16  ;;  %v48_v18 = vadd.f32 %v47_v17, %v40_v15 }
  0x23   :  { %116 = shalt.err (!%p113_p12)
}
  0x24   :  { %s117_s28 = scalar_lea.hbm %s219_s1, 16 }
  0x25   :  { %p118_p13 = scmp.ne.s32.totalorder %s219_s1, %s117_s28  ;;  %p121_p0 = scmp.lt.u32.totalorder %s117_s28, %s219_s1 }
  0x27   :  { %p123_p1 = pnand %p121_p0, %p118_p13 }
  0x29   :  { %126 = shalt.err (!%p123_p1)
}
  0x2a   :  { %59 = dma.vmem_to_hbm [thread:$0]  %s57_s22, 16, %s219_s1, [#allocation4]   ;;  %49 = vst [vmem:[#allocation6] sm:$0x1] %v48_v18 }
  0x2b   :  { %s127_s7 = scalar_lea.vmem %s186_s23, 16  ;;  %s131_s8 = scalar_lea.vmem %s186_s23, 32 }
  0x2c   :  { %p128_p2 = scmp.ne.s32.totalorder %s186_s23, %s127_s7  ;;  %p132_p3 = scmp.lt.s32.totalorder %s186_s23, %s186_s23 }
  0x2d   :  { %p133_p4 = scmp.lt.s32.totalorder %s131_s8, %s127_s7 }
  0x2f   :  { %p134_p5 = por %p133_p4, %p132_p3 }
  0x31   :  { %p135_p6 = pnand %p134_p5, %p128_p2 }
  0x33   :  { %138 = shalt.err (!%p135_p6)
}
  0x34   :  { %s139_s11 = scalar_lea.hbm %s220_s2, 16 }
  0x35   :  { %p140_p7 = scmp.ne.s32.totalorder %s220_s2, %s139_s11  ;;  %p143_p8 = scmp.lt.u32.totalorder %s139_s11, %s220_s2 }
  0x37   :  { %p145_p9 = pnand %p143_p8, %p140_p7 }
  0x39   :  { %148 = shalt.err (!%p145_p9)
}
  0x3a   :  { %69 = dma.vmem_to_hbm [thread:$0]  %s186_s23, 16, %s220_s2, [#allocation7]  }
  0x3b   :  { %151 = dma.done.wait [#allocation4], 16  }
  0x3c   :  { %152 = vsyncadd [#allocation4], 4294967280 }
  0x3d   :  { %153 = dma.done.wait [#allocation7], 16  }
  0x3e   :  { %154 = vsyncadd [#allocation7], 4294967280 }
  0x3f   :  { %76 = vsyncpa [#allocation3], 1 }
  0x40   :  { %77 = vsyncpa [#allocation4], 1 }
  0x41   :  { %78 = vsyncpa [#allocation7], 1 }

</bundles_post_ra>
